<compile_context>
chip_gen: v7x
topology: tpu7x:2x2x1
jax: 0.10.0
libtpu: 0.0.40
codegen_flags: <defaults>
</compile_context>

<pallas_src>
import functools

import jax
import jax.numpy as jnp
from jax import lax
from jax.experimental import pallas as pl
from jax.experimental.pallas import tpu as pltpu


def _round_up(a: int, b: int) -> int:
    return (a + b - 1) // b * b


def _tv_kernel(x_ref, htv_ref, wtv_ref, acc_h_ref, acc_w_ref, *, W, HW):
    """One slab of flattened channels: x_ref is (tn8, 8, HW_pad).

    Per step: roll+mask differences (XLU), square + fold over the leading axis
    (pure VPU vreg adds) into small (8, HW_pad) accumulators.  One expensive
    cross-lane/sublane reduce per sweep, in the last-step epilogue.
    """
    step = pl.program_id(1)

    @pl.when(step == 0)
    def _init():
        acc_h_ref[...] = jnp.zeros_like(acc_h_ref)
        acc_w_ref[...] = jnp.zeros_like(acc_w_ref)

    x = x_ref[...].astype(jnp.float32)                    # (tn8, 8, HW_pad)
    hw_pad = x.shape[-1]

    col = lax.broadcasted_iota(jnp.int32, x.shape, 2)     # flattened pixel idx
    mask_h = col >= W                  # drop wrap-around of the first image row
    mask_w = (col % W) != 0            # drop wrap-around of the first image col
    if hw_pad != HW:                   # trace-time constant: lane padding exists
        valid = col < HW
        mask_h = mask_h & valid
        mask_w = mask_w & valid

    # Height diffs: x[h, w] - x[h-1, w]  ==  x[k] - x[k-W] on the flat axis.
    x_up = pltpu.roll(x, shift=W, axis=2)                 # XLU lane shift by W
    dh = jnp.where(mask_h, x - x_up, 0.0)
    acc_h_ref[...] += jnp.sum(dh * dh, axis=0)            # VPU fold -> (8, HW_pad)

    # Width diffs: x[h, w] - x[h, w-1]  ==  x[k] - x[k-1] on the flat axis.
    x_left = pltpu.roll(x, shift=1, axis=2)
    dw = jnp.where(mask_w, x - x_left, 0.0)
    acc_w_ref[...] += jnp.sum(dw * dw, axis=0)

    # Single expensive full reduce + scalar SMEM write per sweep.
    @pl.when(step == pl.num_programs(1) - 1)
    def _finalize():
        htv_ref[0, 0] = jnp.sum(acc_h_ref[...])
        wtv_ref[0, 0] = jnp.sum(acc_w_ref[...])


def _num_tensorcores_per_chip() -> int:
    # v7x has 2 TensorCores per chip; v5e/v6e have 1.  Heuristic on
    # device_kind with a safe fallback: worst case the parallel axis just runs
    # sequentially (correct either way).
    try:
        kind = jax.devices()[0].device_kind.lower()
    except Exception:
        return 1
    return 2 if ("v7" in kind or "7x" in kind) else 1


def tv_loss(x, tv_loss_weight: float = 1.0):
    """x: (B, C, H, W) array (NCHW, same layout as the PyTorch module)."""
    B, C, H, W = x.shape
    assert H >= 2 and W >= 2, "TV loss requires H >= 2 and W >= 2"
    N = B * C
    HW = H * W

    # Lane-dense layout: one flattened image per channel row, padded to a
    # multiple of 128 lanes so every vreg is full and pltpu.roll operates on a
    # 128-aligned axis.
    HW_pad = _round_up(HW, 128)

    # Split the channel range across TensorCores only where it helps.
    num_tc = _num_tensorcores_per_chip()
    num_splits = num_tc if (num_tc > 1 and N >= 16) else 1

    itemsize = x.dtype.itemsize
    # ~8 MiB input slabs (in x.dtype) amortize the ~0.35us/step overhead on all
    # of v5e/v6e/v7x; the f32 working set (~2 live temporaries) plus the
    # double-buffered input stays under the 48 MiB scoped-VMEM limit below.
    target_block_bytes = 8 * 1024 * 1024
    n_per = pl.cdiv(N, num_splits)
    tn_cap = max(8, (target_block_bytes // (HW_pad * itemsize)) // 8 * 8)
    tn = min(tn_cap, _round_up(n_per, 8))     # channels per step, multiple of 8
    steps = pl.cdiv(n_per, tn)
    N_pad = num_splits * steps * tn           # zero channels contribute exactly 0

    x_flat = x.reshape(N, HW)
    if N_pad != N or HW_pad != HW:
        x_flat = jnp.pad(x_flat, ((0, N_pad - N), (0, HW_pad - HW)))
    x_blk = x_flat.reshape(N_pad // 8, 8, HW_pad)

    tn8 = tn // 8
    kernel = functools.partial(_tv_kernel, W=W, HW=HW)

    flops = 10 * N * HW                       # sub+mul+add (x2 dirs) + mask work
    bytes_accessed = N_pad * HW_pad * itemsize + 8 * num_splits

    h_parts, w_parts = pl.pallas_call(
        kernel,
        out_shape=(
            jax.ShapeDtypeStruct((num_splits, 1), jnp.float32),
            jax.ShapeDtypeStruct((num_splits, 1), jnp.float32),
        ),
        grid_spec=pltpu.PrefetchScalarGridSpec(
            num_scalar_prefetch=0,
            grid=(num_splits, steps),
            in_specs=[
                # (tn8, 8, HW_pad) slabs; last two dims are (8, multiple of
                # 128) and equal the full trailing extents -> no tiling issues.
                pl.BlockSpec((tn8, 8, HW_pad),
                             lambda p, i: (p * steps + i, 0, 0)),
            ],
            out_specs=[
                # One scalar output row per parallel slice (no cross-core race).
                pl.BlockSpec((1, 1), lambda p, i: (p, 0),
                             memory_space=pltpu.SMEM),
                pl.BlockSpec((1, 1), lambda p, i: (p, 0),
                             memory_space=pltpu.SMEM),
            ],
            scratch_shapes=[
                pltpu.VMEM((8, HW_pad), jnp.float32),   # h-diff partial sums
                pltpu.VMEM((8, HW_pad), jnp.float32),   # w-diff partial sums
            ],
        ),
        compiler_params=pltpu.CompilerParams(
            dimension_semantics=("parallel", "arbitrary"),
            vmem_limit_bytes=48 * 1024 * 1024,
        ),
        cost_estimate=pl.CostEstimate(
            flops=flops, transcendentals=0, bytes_accessed=bytes_accessed),
    )(x_blk)

    h_tv = jnp.sum(h_parts)
    w_tv = jnp.sum(w_parts)
    count_h = jnp.float32(C * (H - 1) * W)
    count_w = jnp.float32(C * H * (W - 1))
    return (tv_loss_weight * 2.0 * (h_tv / count_h + w_tv / count_w)
            / jnp.float32(B))


if __name__ == "__main__":
    key = jax.random.PRNGKey(0)
    x = jax.random.normal(key, (2, 4, 16, 16), dtype=jnp.float32)

    loss = tv_loss(x, tv_loss_weight=1.0)
    jax.block_until_ready(loss)

    # Pure-JAX reference check (same math as the PyTorch module).
    B, C, H, W = x.shape
    h_tv_ref = jnp.sum((x[:, :, 1:, :] - x[:, :, :-1, :]) ** 2)
    w_tv_ref = jnp.sum((x[:, :, :, 1:] - x[:, :, :, :-1]) ** 2)
    ref = 2.0 * (h_tv_ref / (C * (H - 1) * W)
                 + w_tv_ref / (C * H * (W - 1))) / B
    assert jnp.allclose(loss, ref, rtol=1e-5, atol=1e-5), (loss, ref)

    print("KERNEL_OK")
</pallas_src>

<mosaic_0001>
module attributes {stable_mosaic.version = 11 : i64} {
  func.func @_tv_kernel(%arg0: i32, %arg1: i32, %arg2: memref<1x8x256xf32, #tpu.memory_space<vmem>>, %arg3: memref<1x1xf32, #tpu.memory_space<smem>>, %arg4: memref<1x1xf32, #tpu.memory_space<smem>>, %arg5: memref<8x256xf32, #tpu.memory_space<vmem>>, %arg6: memref<8x256xf32, #tpu.memory_space<vmem>>) attributes {dimension_semantics = [#tpu.dimension_semantics<parallel>, #tpu.dimension_semantics<arbitrary>], iteration_bounds = array<i64: 1, 1>, scalar_prefetch = 0 : i64, scratch_operands = 2 : i64, tpu.core_type = #tpu.core_type<tc>, window_params = [{transform_indices = @transform_0, window_bounds = array<i64: 1, 8, 256>}, {transform_indices = @transform_1, window_bounds = array<i64: 1, 1>}, {transform_indices = @transform_2, window_bounds = array<i64: 1, 1>}]} {
    %c0_i32 = arith.constant 0 : i32
    %0 = arith.cmpi eq, %arg1, %c0_i32 : i32
    %1 = arith.extui %0 : i1 to i32
    %c0_i32_0 = arith.constant 0 : i32
    %2 = arith.cmpi ne, %1, %c0_i32_0 : i32
    scf.if %2 {
      %cst_24 = arith.constant 0.000000e+00 : f32
      %46 = vector.broadcast %cst_24 : f32 to vector<8x256xf32>
      %c0_25 = arith.constant 0 : index
      %c0_26 = arith.constant 0 : index
      %47 = vector.load %arg5[%c0_25, %c0_26] : memref<8x256xf32, #tpu.memory_space<vmem>>, vector<8x256xf32>
      tpu.vector_store %arg5[%c0_25, %c0_26], %46 {strides = array<i32>} : memref<8x256xf32, #tpu.memory_space<vmem>>, vector<8x256xf32>,
      %cst_27 = arith.constant 0.000000e+00 : f32
      %48 = vector.broadcast %cst_27 : f32 to vector<8x256xf32>
      %c0_28 = arith.constant 0 : index
      %c0_29 = arith.constant 0 : index
      %49 = vector.load %arg6[%c0_28, %c0_29] : memref<8x256xf32, #tpu.memory_space<vmem>>, vector<8x256xf32>
      tpu.vector_store %arg6[%c0_28, %c0_29], %48 {strides = array<i32>} : memref<8x256xf32, #tpu.memory_space<vmem>>, vector<8x256xf32>,
    } else {
    }
    %c0 = arith.constant 0 : index
    %c0_1 = arith.constant 0 : index
    %c0_2 = arith.constant 0 : index
    %3 = vector.load %arg2[%c0, %c0_1, %c0_2] : memref<1x8x256xf32, #tpu.memory_space<vmem>>, vector<1x8x256xf32>
    %4 = tpu.iota {dimensions = array<i32: 2>} : vector<1x8x256xi32>
    %c16_i32 = arith.constant 16 : i32
    %5 = vector.broadcast %c16_i32 : i32 to vector<1x8x256xi32>
    %6 = arith.cmpi sge, %4, %5 : vector<1x8x256xi32>
    %c16_i32_3 = arith.constant 16 : i32
    %c0_i32_4 = arith.constant 0 : i32
    %7 = arith.cmpi eq, %c16_i32_3, %c0_i32_4 : i32
    %c1_i32 = arith.constant 1 : i32
    %8 = arith.select %7, %c1_i32, %c16_i32_3 : i32
    %9 = vector.broadcast %8 : i32 to vector<1x8x256xi32>
    %10 = arith.remsi %4, %9 : vector<1x8x256xi32>
    %c0_i32_5 = arith.constant 0 : i32
    %11 = vector.broadcast %c0_i32_5 : i32 to vector<1x8x256xi32>
    %12 = arith.cmpi ne, %10, %11 : vector<1x8x256xi32>
    %c0_i32_6 = arith.constant 0 : i32
    %13 = vector.broadcast %c0_i32_6 : i32 to vector<1x8x256xi32>
    %14 = arith.cmpi slt, %10, %13 : vector<1x8x256xi32>
    %c0_i32_7 = arith.constant 0 : i32
    %15 = arith.cmpi slt, %8, %c0_i32_7 : i32
    %16 = vector.broadcast %15 : i1 to vector<1x8x256xi1>
    %17 = vector.broadcast %16 : vector<1x8x256xi1> to vector<1x8x256xi1>
    %18 = arith.xori %14, %17 : vector<1x8x256xi1>
    %19 = arith.andi %18, %12 : vector<1x8x256xi1>
    %20 = vector.broadcast %8 : i32 to vector<1x8x256xi32>
    %21 = arith.addi %10, %20 : vector<1x8x256xi32>
    %22 = arith.select %19, %21, %10 : vector<1x8x256xi1>, vector<1x8x256xi32>
    %c0_i32_8 = arith.constant 0 : i32
    %23 = vector.broadcast %c0_i32_8 : i32 to vector<1x8x256xi32>
    %24 = arith.cmpi ne, %22, %23 : vector<1x8x256xi32>
    %c16_i32_9 = arith.constant 16 : i32
    %25 = tpu.dynamic_rotate %3 by %c16_i32_9 dim 2 : vector<1x8x256xf32>, i32 -> vector<1x8x256xf32>
    %26 = arith.subf %3, %25 : vector<1x8x256xf32>
    %cst = arith.constant 0.000000e+00 : f32
    %27 = vector.broadcast %cst : f32 to vector<1x8x256xf32>
    %28 = arith.select %6, %26, %27 : vector<1x8x256xi1>, vector<1x8x256xf32>
    %c0_10 = arith.constant 0 : index
    %c0_11 = arith.constant 0 : index
    %29 = vector.load %arg5[%c0_10, %c0_11] : memref<8x256xf32, #tpu.memory_space<vmem>>, vector<8x256xf32>
    %30 = arith.mulf %28, %28 : vector<1x8x256xf32>
    %cst_12 = arith.constant dense<0.000000e+00> : vector<8x256xf32>
    %31 = vector.multi_reduction <add>, %30, %cst_12 [0] : vector<1x8x256xf32> to vector<8x256xf32>
    %32 = arith.addf %29, %31 : vector<8x256xf32>
    %c0_13 = arith.constant 0 : index
    %c0_14 = arith.constant 0 : index
    %33 = vector.load %arg5[%c0_13, %c0_14] : memref<8x256xf32, #tpu.memory_space<vmem>>, vector<8x256xf32>
    tpu.vector_store %arg5[%c0_13, %c0_14], %32 {strides = array<i32>} : memref<8x256xf32, #tpu.memory_space<vmem>>, vector<8x256xf32>,
    %c1_i32_15 = arith.constant 1 : i32
    %34 = tpu.dynamic_rotate %3 by %c1_i32_15 dim 2 : vector<1x8x256xf32>, i32 -> vector<1x8x256xf32>
    %35 = arith.subf %3, %34 : vector<1x8x256xf32>
    %cst_16 = arith.constant 0.000000e+00 : f32
    %36 = vector.broadcast %cst_16 : f32 to vector<1x8x256xf32>
    %37 = arith.select %24, %35, %36 : vector<1x8x256xi1>, vector<1x8x256xf32>
    %c0_17 = arith.constant 0 : index
    %c0_18 = arith.constant 0 : index
    %38 = vector.load %arg6[%c0_17, %c0_18] : memref<8x256xf32, #tpu.memory_space<vmem>>, vector<8x256xf32>
    %39 = arith.mulf %37, %37 : vector<1x8x256xf32>
    %cst_19 = arith.constant dense<0.000000e+00> : vector<8x256xf32>
    %40 = vector.multi_reduction <add>, %39, %cst_19 [0] : vector<1x8x256xf32> to vector<8x256xf32>
    %41 = arith.addf %38, %40 : vector<8x256xf32>
    %c0_20 = arith.constant 0 : index
    %c0_21 = arith.constant 0 : index
    %42 = vector.load %arg6[%c0_20, %c0_21] : memref<8x256xf32, #tpu.memory_space<vmem>>, vector<8x256xf32>
    tpu.vector_store %arg6[%c0_20, %c0_21], %41 {strides = array<i32>} : memref<8x256xf32, #tpu.memory_space<vmem>>, vector<8x256xf32>,
    %c0_i32_22 = arith.constant 0 : i32
    %43 = arith.cmpi eq, %arg1, %c0_i32_22 : i32
    %44 = arith.extui %43 : i1 to i32
    %c0_i32_23 = arith.constant 0 : i32
    %45 = arith.cmpi ne, %44, %c0_i32_23 : i32
    scf.if %45 {
      %c0_24 = arith.constant 0 : index
      %c0_25 = arith.constant 0 : index
      %46 = vector.load %arg5[%c0_24, %c0_25] : memref<8x256xf32, #tpu.memory_space<vmem>>, vector<8x256xf32>
      %47 = vector.shape_cast %46 : vector<8x256xf32> to vector<1x8x256xf32>
      %cst_26 = arith.constant dense<0.000000e+00> : vector<1xf32>
      %48 = vector.multi_reduction <add>, %47, %cst_26 [1, 2] : vector<1x8x256xf32> to vector<1xf32>
      %49 = vector.shape_cast %48 : vector<1xf32> to vector<1x1x1xf32>
      %50 = vector.extract %49[0, 0, 0] : f32 from vector<1x1x1xf32>
      %c0_27 = arith.constant 0 : index
      %c0_28 = arith.constant 0 : index
      %51 = memref.load %arg3[%c0_27, %c0_28] : memref<1x1xf32, #tpu.memory_space<smem>>
      memref.store %50, %arg3[%c0_27, %c0_28] : memref<1x1xf32, #tpu.memory_space<smem>>
      %c0_29 = arith.constant 0 : index
      %c0_30 = arith.constant 0 : index
      %52 = vector.load %arg6[%c0_29, %c0_30] : memref<8x256xf32, #tpu.memory_space<vmem>>, vector<8x256xf32>
      %53 = vector.shape_cast %52 : vector<8x256xf32> to vector<1x8x256xf32>
      %cst_31 = arith.constant dense<0.000000e+00> : vector<1xf32>
      %54 = vector.multi_reduction <add>, %53, %cst_31 [1, 2] : vector<1x8x256xf32> to vector<1xf32>
      %55 = vector.shape_cast %54 : vector<1xf32> to vector<1x1x1xf32>
      %56 = vector.extract %55[0, 0, 0] : f32 from vector<1x1x1xf32>
      %c0_32 = arith.constant 0 : index
      %c0_33 = arith.constant 0 : index
      %57 = memref.load %arg4[%c0_32, %c0_33] : memref<1x1xf32, #tpu.memory_space<smem>>
      memref.store %56, %arg4[%c0_32, %c0_33] : memref<1x1xf32, #tpu.memory_space<smem>>
    } else {
    }
    return
  }
  func.func @transform_0(%arg0: i32, %arg1: i32) -> (i32, i32, i32) {
    %c1_i32 = arith.constant 1 : i32
    %0 = arith.muli %arg0, %c1_i32 : i32
    %1 = arith.addi %0, %arg1 : i32
    %c0_i32 = arith.constant 0 : i32
    %c0_i32_0 = arith.constant 0 : i32
    %c0_i32_1 = arith.constant 0 : i32
    return %1, %c0_i32, %c0_i32_0 : i32, i32, i32
  }
  func.func @transform_1(%arg0: i32, %arg1: i32) -> (i32, i32) {
    %c0_i32 = arith.constant 0 : i32
    %c0_i32_0 = arith.constant 0 : i32
    return %arg0, %c0_i32 : i32, i32
  }
  func.func @transform_2(%arg0: i32, %arg1: i32) -> (i32, i32) {
    %c0_i32 = arith.constant 0 : i32
    %c0_i32_0 = arith.constant 0 : i32
    return %arg0, %c0_i32 : i32, i32
  }
}

</mosaic_0001>

<bundles_post_ra>
// kernel: tpu_custom_call.1
= control target key start
LH: loop header
LB: loop body
LE: loop exit
PB: predicated region body
PF: predicated region fallthrough
CT: control target
= control target key end

     0   :  { %8 = vsyncpa [#allocation5], 0  ;;  %s282_s0 = inlined_call_operand.hbm [shape: f32[1,8,256], index: 0, kind: input, shape index: {}]   ;;  %s283_s1 = inlined_call_operand.hbm [shape: f32[1,1], index: 1, kind: output, shape index: {0}]   ;;  %s284_s2 = inlined_call_operand.hbm [shape: f32[1,1], index: 2, kind: output, shape index: {1}]  }
   0x1   :  { %9 = vsyncpa [#allocation6], 0 }
   0x2   :  { %10 = vsyncpa [#allocation9], 0  ;;  %s226_s9 = smov [#allocation4]   ;;  %s178_s13 = scalar_lea.hbm %s282_s0, 256 }
   0x3   :  { %s21_s10 = sshll.u32 %s226_s9, 4  ;;  %p179_p0 = scmp.ne.s32.totalorder %s282_s0, %s178_s13  ;;  %s22_s10 = int_to_ptr.vmem [resolvable:$true] %s21_s10 }
   0x4   :  { %p182_p1 = scmp.lt.u32.totalorder %s178_s13, %s282_s0 }
   0x6   :  { %p184_p2 = pnand %p182_p1, %p179_p0 }
   0x8   :  { %187 = shalt.err (!%p184_p2)
}
   0x9   :  { %s188_s18 = scalar_lea.vmem %s22_s10, 256  ;;  %p193_p4 = scmp.lt.s32.totalorder %s22_s10, %s22_s10 }
   0xa   :  { %p189_p3 = scmp.ne.s32.totalorder %s22_s10, %s188_s18  ;;  %p194_p5 = scmp.lt.s32.totalorder %s188_s18, %s188_s18 }
   0xc   :  { %p195_p6 = por %p194_p5, %p193_p4 }
   0xe   :  { %p196_p7 = pnand %p195_p6, %p189_p3 }
  0x10   :  { %199 = shalt.err (!%p196_p7)
}
  0x11   :  { %24 = dma.hbm_to_vmem [thread:$0]  %s282_s0, 256, %s22_s10, [#allocation5]  }
  0x12   :  { %220 = dma.done.wait [#allocation5], 256  }
  0x13   :  { %221 = vsyncadd [#allocation5], 4294967040  ;;  %v37_v0 = vld [vmem:[#allocation4] sm:$0xff]  ;;  %s227_s21 = smov 1   ;;  %s228_s22 = smov 16   ;;  %v38_v1 = vld [vmem:[#allocation4 + $0x8] sm:$0xff]  ;;  %v39_v2 = vlaneseq }
  0x14   :  { %91 = vrot.lane.b32.xlu1 %v37_v0, %s227_s21  ;;  %70 = vrot.lane.b32.xlu0 %v37_v0, %s228_s22  ;;  %s200_s26 = scalar_lea.hbm %s283_s1, 16 }
  0x15   :  { %v40_v3 = vand.u32 127, %v39_v2  ;;  %p201_p8 = scmp.ne.s32.totalorder %s283_s1, %s200_s26  ;;  %p204_p9 = scmp.lt.u32.totalorder %s200_s26, %s283_s1 }
  0x17   :  { %v41_v4 = vadd.s32 128, %v40_v3  ;;  %v48_v7 = vand.u32 15, %v40_v3  ;;  %vm95_vm0 = vcmp.lt.s32.totalorder %v40_v3, 1  ;;  %vm74_vm1 = vcmp.lt.s32.totalorder %v40_v3, 16  ;;  %p206_p10 = pnand %p204_p9, %p201_p8 }
  0x18   :  { %93 = vrot.lane.b32.xlu1 %v38_v1, %s227_s21  ;;  %72 = vrot.lane.b32.xlu0 %v38_v1, %s228_s22  ;;  %vm42_vm4 = vcmp.ge.s32.totalorder %v40_v3, 16 }
  0x19   :  { %v55_v8 = vand.u32 15, %v41_v4  ;;  %vm68_vm2 = vcmp.ne.s32.totalorder %v48_v7, 0 }
  0x1b   :  { %vm69_vm3 = vcmp.ne.s32.totalorder %v55_v8, 0 }
  0x86   :  { %v92_v5 = vpop.permute.xlu1 %91  ;;  %v71_v6 = vpop.permute.xlu0 %70 }
  0x8a   :  { %v94_v9 = vpop.permute.xlu1 %93  ;;  %v73_v10 = vpop.permute.xlu0 %72 }
  0x8b   :  { %v96_v11 = vsel %vm95_vm0, %v92_v5, %v94_v9  ;;  %v97_v12 = vsel %vm95_vm0, %v94_v9, %v92_v5  ;;  %v75_v13 = vsel %vm74_vm1, %v71_v6, %v73_v10  ;;  %v76_v14 = vsel %vm74_vm1, %v73_v10, %v71_v6 }
  0x8c   :  { %v98_v15 = vsub.f32 %v37_v0, %v97_v12  ;;  %v99_v16 = vsub.f32 %v38_v1, %v96_v11  ;;  %v77_v17 = vsub.f32 %v37_v0, %v76_v14  ;;  %v78_v18 = vsub.f32 %v38_v1, %v75_v13 }
  0x8e   :  { %v84_v19 = vmul.f32 %v78_v18, %v78_v18  ;;  %v100_v20 = vsel %vm68_vm2, %v98_v15, 0.0  ;;  %v101_v21 = vsel %vm69_vm3, %v99_v16, 0.0  ;;  %v79_v22 = vsel %vm42_vm4, %v77_v17, 0.0 }
  0x8f   :  { %v104_v23 = vmul.f32 %v100_v20, %v100_v20  ;;  %v105_v24 = vmul.f32 %v101_v21, %v101_v21  ;;  %v83_v25 = vmul.f32 %v79_v22, %v79_v22 }
  0x91   :  { %v131_v26 = vadd.f32 %v105_v24, %v104_v23  ;;  %v117_v27 = vadd.f32 %v84_v19, %v83_v25 }
  0x93   :  { %132 = vadd.xlane.f32.xlu1 %v131_v26  ;;  %118 = vadd.xlane.f32.xlu0 %v117_v27 }
 0x120   :  { %v133_v28 = vpop.xlane.xlu1 %132  ;;  %v119_v29 = vpop.xlane.xlu0 %118 }
 0x121   :  { %v134_v30 = vrot.slane %v133_v28, 4  ;;  %v120_v31 = vrot.slane %v119_v29, 4 }
 0x123   :  { %v135_v32 = vadd.f32 %v134_v30, %v133_v28  ;;  %v121_v33 = vadd.f32 %v120_v31, %v119_v29 }
 0x125   :  { %v136_v34 = vrot.slane %v135_v32, 2  ;;  %v122_v35 = vrot.slane %v121_v33, 2 }
 0x127   :  { %v137_v36 = vadd.f32 %v136_v34, %v135_v32  ;;  %v123_v37 = vadd.f32 %v122_v35, %v121_v33 }
 0x129   :  { %v124_v38 = vrot.slane %v123_v37, 1  ;;  %v138_v39 = vrot.slane %v137_v36, 1 }
 0x12b   :  { %v125_v40 = vadd.f32 %v124_v38, %v123_v37  ;;  %v139_v41 = vadd.f32 %v138_v39, %v137_v36 }
 0x12d   :  { %169 = vpush %v125_v40 }
 0x12e   :  { %171 = vpush %v139_v41 }
 0x15e   :  { %s170_s0 = spop %169 }
 0x15f   :  { %128 = sst [smem:[#allocation7]] %s170_s0  ;;  %s172_s23 = spop %171 }
 0x160   :  { %142 = sst [smem:[#allocation8]] %s172_s23 }
 0x161   :  { %209 = shalt.err (!%p206_p10)
}
 0x162   :  { %s229_s3 = smov [#allocation7]   ;;  %s210_s8 = scalar_lea.hbm %s284_s2, 16 }
 0x163   :  { %150 = dma.smem_to_hbm %s229_s3, 16, %s283_s1, [#allocation6]  }
 0x164   :  { %p211_p11 = scmp.ne.s32.totalorder %s284_s2, %s210_s8  ;;  %p214_p12 = scmp.lt.u32.totalorder %s210_s8, %s284_s2 }
 0x166   :  { %p216_p13 = pnand %p214_p12, %p211_p11 }
 0x168   :  { %219 = shalt.err (!%p216_p13)
}
 0x169   :  { %s230_s13 = smov [#allocation8]  }
 0x16a   :  { %158 = dma.smem_to_hbm %s230_s13, 16, %s284_s2, [#allocation9]  }
 0x16b   :  { %222 = dma.done.wait [#allocation6], 16  }
 0x16c   :  { %223 = vsyncadd [#allocation6], 4294967280 }
 0x16d   :  { %224 = dma.done.wait [#allocation9], 16  }
 0x16e   :  { %225 = vsyncadd [#allocation9], 4294967280 }
 0x16f   :  { %165 = sfence }
 0x170   :  { %166 = vsyncpa [#allocation5], 1 }
 0x171   :  { %167 = vsyncpa [#allocation6], 1 }
 0x172   :  { %168 = vsyncpa [#allocation9], 1 }

</bundles_post_ra>
